<compile_context>
chip_gen: v7x
topology: tpu7x:2x2x1
jax: 0.10.0
libtpu: 0.0.40
codegen_flags: <defaults>
</compile_context>

<pallas_src>
import functools
import math

import jax
import jax.numpy as jnp
from jax.experimental import pallas as pl
from jax.experimental.pallas import tpu as pltpu


# ----------------------------- fused kernel --------------------------------

def _make_kernel(n_layers, hidden, batch, n_words, n_chars):
    L, H, B = n_layers, hidden, batch
    NW, NC = n_words, n_chars
    G = 4 * H  # gate width == wide lane width of the resident state

    def lstm_gates(gates, c_prev):
        # gates: [B, 4H], gate order i, f, g, o (PyTorch LSTM convention).
        # Single full-width sigmoid pass (one EUP chain); the tanh gate uses
        # tanh(x) = 2*sigmoid(2x) - 1 via a lane select (VPU filler).
        lane = jax.lax.broadcasted_iota(jnp.int32, gates.shape, 1)
        is_g = (lane >= 2 * H) & (lane < 3 * H)
        s = jax.nn.sigmoid(jnp.where(is_g, gates * 2.0, gates))
        act = jnp.where(is_g, s * 2.0 - 1.0, s)
        i_g = act[:, 0:H]
        f_g = act[:, H:2 * H]
        g_g = act[:, 2 * H:3 * H]
        o_g = act[:, 3 * H:4 * H]
        c_new = f_g * c_prev + i_g * g_g
        h_new = o_g * jnp.tanh(c_new)
        return h_new, c_new

    def kernel(*refs):
        # ---- unpack (prefetch, inputs, outputs, scratch) -------------------
        idx_ref = refs[0]                                   # SMEM int32 [T*B*2]
        h0_ref, c0_ref, w0_ref, b0_ref = refs[1:5]
        pos = 5
        upper = []
        for _ in range(L - 1):
            upper.append(refs[pos:pos + 2])                 # (w_stack, b)
            pos += 2
        wdec_ref, bdec_ref = refs[pos:pos + 2]
        pos += 2
        logits_ref, hout_ref, cout_ref = refs[pos:pos + 3]
        pos += 3
        h_scr, c_scr, x_slab = refs[pos:pos + 3]

        t = pl.program_id(0)

        # ---- one-time init of the VMEM-resident recurrent state -----------
        @pl.when(t == 0)
        def _init():
            h_scr[...] = jnp.zeros_like(h_scr)              # zero lane tail
            h_scr[:, :, 0:H] = h0_ref[...]
            c_scr[...] = c0_ref[...]
            x_slab[...] = jnp.zeros_like(x_slab)            # zero unused lanes

        # ---- token indices for this step (SMEM scalar reads) --------------
        base = t * (2 * B)
        sub = jax.lax.broadcasted_iota(jnp.int32, (B, 1), 0)
        col_w = jnp.zeros((B, 1), jnp.int32)
        col_c = jnp.zeros((B, 1), jnp.int32)
        for b in range(B):
            col_w = jnp.where(sub == b, idx_ref[base + 2 * b + 0], col_w)
            col_c = jnp.where(sub == b, idx_ref[base + 2 * b + 1], col_c)

        # ---- layer 0: two-hot gather folded into one K=4H matmul ----------
        # x0 lanes: [0,H) = h_prev (from wide, zero-tailed scratch),
        #           [H,H+NW) = word one-hot, [H+NW,H+NW+NC) = char one-hot.
        lane = jax.lax.broadcasted_iota(jnp.int32, (B, G), 1)
        hot = (lane == H + col_w) | (lane == H + NW + col_c)
        x0 = h_scr[0] + jnp.where(hot, 1.0, 0.0)
        gates = (jnp.dot(x0, w0_ref[...], preferred_element_type=jnp.float32)
                 + b0_ref[...])
        h_new, c_new = lstm_gates(gates, c_scr[0])
        h_scr[0, :, 0:H] = h_new
        c_scr[0] = c_new

        # ---- LSTM layers 1..L-1 (single stacked matmul each) --------------
        # TODO(synk): inter-layer dropout is training-only; eval = identity.
        for l in range(1, L):
            w_ref, b_ref = upper[l - 1]
            x_slab[:, 0:H] = h_new                 # layer input
            x_slab[:, H:2 * H] = h_scr[l, :, 0:H]  # previous hidden of layer l
            gates = (jnp.dot(x_slab[...], w_ref[...],
                             preferred_element_type=jnp.float32)
                     + b_ref[...])
            h_new, c_new = lstm_gates(gates, c_scr[l])
            h_scr[l, :, 0:H] = h_new
            c_scr[l] = c_new

        # ---- decoder (128-lane-dense padded vocab) -------------------------
        logits_ref[0] = (jnp.dot(h_new, wdec_ref[...],
                                 preferred_element_type=jnp.float32)
                         + bdec_ref[...])

        # ---- final-state writeback (once, at the last step) ----------------
        @pl.when(t == pl.num_programs(0) - 1)
        def _finalize():
            hout_ref[...] = h_scr[:, :, 0:H]
            cout_ref[...] = c_scr[...]

    return kernel


# ----------------------------- model wrappers -------------------------------

def _const_index_map(ndim):
    zeros = (0,) * ndim
    return lambda t, idx_ref: zeros


@functools.partial(jax.jit, static_argnames=("n_words", "n_chars"))
def model_forward_seq(kparams, idx_seq, hidden, *, n_words, n_chars):
    """Run T fused decode steps.

    idx_seq: int32 [T, B, 2] (word idx, char-ngram idx); hidden: (h, c),
    each [L, B, H].  Returns (logits [T, B, n_words], (h_new, c_new)).
    """
    h0, c0 = hidden
    L, B, H = h0.shape
    T = idx_seq.shape[0]
    n_pad = kparams["w_dec"].shape[1]

    idx_flat = idx_seq.astype(jnp.int32).reshape(-1)        # 1-D for SMEM

    flat_inputs = [h0, c0, kparams["w0_stack"], kparams["b0"]]
    for p in kparams["upper"]:
        flat_inputs += [p["w_stack"], p["b"]]
    flat_inputs += [kparams["w_dec"], kparams["b_dec"]]

    # Constant index_maps -> each weight / initial state DMA'd into VMEM once
    # and resident across all T grid steps.
    in_specs = [pl.BlockSpec(a.shape, _const_index_map(a.ndim))
                for a in flat_inputs]

    out_shape = (
        jax.ShapeDtypeStruct((T, B, n_pad), jnp.float32),    # logits (padded)
        jax.ShapeDtypeStruct((L, B, H), jnp.float32),        # final h
        jax.ShapeDtypeStruct((L, B, H), jnp.float32),        # final c
    )
    out_specs = (
        pl.BlockSpec((1, B, n_pad), lambda t, idx_ref: (t, 0, 0)),
        pl.BlockSpec((L, B, H), _const_index_map(3)),
        pl.BlockSpec((L, B, H), _const_index_map(3)),
    )

    grid_spec = pltpu.PrefetchScalarGridSpec(
        num_scalar_prefetch=1,
        grid=(T,),
        in_specs=in_specs,
        out_specs=out_specs,
        scratch_shapes=[
            pltpu.VMEM((L, B, 4 * H), jnp.float32),   # h state (lane-dense)
            pltpu.VMEM((L, B, H), jnp.float32),       # c state
            pltpu.VMEM((B, 4 * H), jnp.float32),      # matmul operand slab
        ],
    )

    logits_pad, h_new, c_new = pl.pallas_call(
        _make_kernel(L, H, B, n_words, n_chars),
        out_shape=out_shape,
        grid_spec=grid_spec,
        compiler_params=pltpu.CompilerParams(
            dimension_semantics=("arbitrary",)),   # recurrence: sequential axis
    )(idx_flat, *flat_inputs)

    return logits_pad[:, :, :n_words], (h_new, c_new)


def model_forward(kparams, inp, hidden, *, n_words, n_chars):
    """One decode step: matches Model.forward (general batch branch, eval)."""
    logits, hidden = model_forward_seq(kparams, inp[None], hidden,
                                       n_words=n_words, n_chars=n_chars)
    return logits[0], hidden


# ----------------------------- parameters ----------------------------------

def init_params(key, n_words, n_chars, hidden, n_layers):
    """Synthetic params matching the PyTorch module's shapes (pre-transposed)."""
    k = 1.0 / math.sqrt(hidden)
    keys = iter(jax.random.split(key, 4 + 4 * n_layers))

    def u(shape):
        return jax.random.uniform(next(keys), shape, jnp.float32, -k, k)

    params = {
        "word_emb": jax.random.normal(next(keys), (n_words, hidden), jnp.float32),
        "char_emb": jax.random.normal(next(keys), (n_chars, hidden), jnp.float32),
        "layers": [],
    }
    for layer in range(n_layers):
        d_in = 2 * hidden if layer == 0 else hidden
        params["layers"].append({
            "w_ih": u((d_in, 4 * hidden)),                   # PyTorch W_ih^T
            "w_hh": u((hidden, 4 * hidden)),                 # PyTorch W_hh^T
            "b": u((1, 4 * hidden)) + u((1, 4 * hidden)),    # b_ih + b_hh
        })
    params["w_dec"] = u((hidden, n_words))
    params["b_dec"] = u((1, n_words))
    return params


def prepare_params(raw):
    """Repack raw (PyTorch-layout) params into the kernel's fused layout."""
    n_words, hidden = raw["word_emb"].shape
    n_chars = raw["char_emb"].shape[0]
    G = 4 * hidden
    assert hidden + n_words + n_chars <= G, (
        "demo layout keeps the layer-0 operand within 4H lanes")

    l0 = raw["layers"][0]
    # Fold the embedding tables into the layer-0 input weight (gather == two-hot
    # matmul in-kernel), stacked with W_hh so layer 0 is a single MXU push.
    w0 = jnp.zeros((G, G), jnp.float32)
    w0 = w0.at[0:hidden].set(l0["w_hh"])
    w0 = w0.at[hidden:hidden + n_words].set(raw["word_emb"] @ l0["w_ih"][:hidden])
    w0 = w0.at[hidden + n_words:hidden + n_words + n_chars].set(
        raw["char_emb"] @ l0["w_ih"][hidden:])

    upper = []
    for p in raw["layers"][1:]:
        w = jnp.zeros((G, G), jnp.float32)
        w = w.at[0:hidden].set(p["w_ih"])
        w = w.at[hidden:2 * hidden].set(p["w_hh"])
        upper.append({"w_stack": w, "b": p["b"]})

    n_pad = ((n_words + 127) // 128) * 128
    w_dec = jnp.zeros((hidden, n_pad), jnp.float32).at[:, :n_words].set(raw["w_dec"])
    b_dec = jnp.zeros((1, n_pad), jnp.float32).at[:, :n_words].set(raw["b_dec"])
    return {"w0_stack": w0, "b0": l0["b"], "upper": upper,
            "w_dec": w_dec, "b_dec": b_dec}


# ----------------------------- pure-JAX reference --------------------------

def reference_forward(params, inp, hidden):
    """Pure-JAX equivalent of Model.forward (general batch branch, eval)."""
    h_all, c_all = hidden
    H = h_all.shape[-1]
    layer_in = jnp.concatenate([params["word_emb"][inp[:, 0]],
                                params["char_emb"][inp[:, 1]]], axis=1)
    new_h, new_c = [], []
    for l, p in enumerate(params["layers"]):
        gates = layer_in @ p["w_ih"] + h_all[l] @ p["w_hh"] + p["b"]
        i_g = jax.nn.sigmoid(gates[:, :H])
        f_g = jax.nn.sigmoid(gates[:, H:2 * H])
        g_g = jnp.tanh(gates[:, 2 * H:3 * H])
        o_g = jax.nn.sigmoid(gates[:, 3 * H:])
        c_l = f_g * c_all[l] + i_g * g_g
        h_l = o_g * jnp.tanh(c_l)
        new_h.append(h_l)
        new_c.append(c_l)
        layer_in = h_l
    logits = layer_in @ params["w_dec"] + params["b_dec"]
    return logits, (jnp.stack(new_h, 0), jnp.stack(new_c, 0))


# --------------------------------- main -------------------------------------

if __name__ == "__main__":
    N_WORDS = 64          # len(word2idx)  (synthetic)
    N_CHARS = 16          # len(char_dict) (synthetic)
    HIDDEN = 32           # opt.hidden_size_rnn
    N_LAYERS = 2          # opt.n_layers_rnn
    BATCH = 4             # batch != 2 -> general forward branch
    SEQ = 8               # fused decode steps

    key = jax.random.PRNGKey(0)
    kp, ki = jax.random.split(key)
    raw_params = init_params(kp, N_WORDS, N_CHARS, HIDDEN, N_LAYERS)
    kparams = prepare_params(raw_params)

    kw, kc = jax.random.split(ki)
    word_idx = jax.random.randint(kw, (SEQ, BATCH, 1), 0, N_WORDS, jnp.int32)
    char_idx = jax.random.randint(kc, (SEQ, BATCH, 1), 0, N_CHARS, jnp.int32)
    idx_seq = jnp.concatenate([word_idx, char_idx], axis=2)   # [T, B, 2]

    h0 = jnp.zeros((N_LAYERS, BATCH, HIDDEN), jnp.float32)
    c0 = jnp.zeros((N_LAYERS, BATCH, HIDDEN), jnp.float32)

    # Fused multi-step kernel.
    logits_seq, (h_new, c_new) = model_forward_seq(
        kparams, idx_seq, (h0, c0), n_words=N_WORDS, n_chars=N_CHARS)
    jax.block_until_ready((logits_seq, h_new, c_new))

    # Pure-JAX reference: apply Model.forward step by step.
    ref_logits = []
    rh, rc = h0, c0
    for t in range(SEQ):
        lg, (rh, rc) = reference_forward(raw_params, idx_seq[t], (rh, rc))
        ref_logits.append(lg)
    ref_logits = jnp.stack(ref_logits, 0)

    assert logits_seq.shape == (SEQ, BATCH, N_WORDS)
    assert jnp.allclose(logits_seq, ref_logits, atol=1e-4, rtol=1e-4)
    assert jnp.allclose(h_new, rh, atol=1e-4, rtol=1e-4)
    assert jnp.allclose(c_new, rc, atol=1e-4, rtol=1e-4)

    # Single-step forward (the module's forward signature).
    logits1, _ = model_forward(kparams, idx_seq[0], (h0, c0),
                               n_words=N_WORDS, n_chars=N_CHARS)
    ref1, _ = reference_forward(raw_params, idx_seq[0], (h0, c0))
    assert jnp.allclose(logits1, ref1, atol=1e-4, rtol=1e-4)

    print("KERNEL_OK")
</pallas_src>

<mosaic_0001>
module attributes {stable_mosaic.version = 11 : i64} {
  func.func @kernel(%arg0: i32, %arg1: memref<64xi32, #tpu.memory_space<smem>>, %arg2: memref<2x4x32xf32, #tpu.memory_space<vmem>>, %arg3: memref<2x4x32xf32, #tpu.memory_space<vmem>>, %arg4: memref<128x128xf32, #tpu.memory_space<vmem>>, %arg5: memref<1x128xf32, #tpu.memory_space<vmem>>, %arg6: memref<128x128xf32, #tpu.memory_space<vmem>>, %arg7: memref<1x128xf32, #tpu.memory_space<vmem>>, %arg8: memref<32x128xf32, #tpu.memory_space<vmem>>, %arg9: memref<1x128xf32, #tpu.memory_space<vmem>>, %arg10: memref<1x4x128xf32, #tpu.memory_space<vmem>>, %arg11: memref<2x4x32xf32, #tpu.memory_space<vmem>>, %arg12: memref<2x4x32xf32, #tpu.memory_space<vmem>>, %arg13: memref<2x4x128xf32, #tpu.memory_space<vmem>>, %arg14: memref<2x4x32xf32, #tpu.memory_space<vmem>>, %arg15: memref<4x128xf32, #tpu.memory_space<vmem>>) attributes {dimension_semantics = [#tpu.dimension_semantics<arbitrary>], iteration_bounds = array<i64: 8>, scalar_prefetch = 1 : i64, scratch_operands = 3 : i64, tpu.core_type = #tpu.core_type<tc>, window_params = [{pipeline_mode = #tpu.pipeline_mode<synchronous>, transform_indices = @transform_0, window_bounds = array<i64: 2, 4, 32>}, {pipeline_mode = #tpu.pipeline_mode<synchronous>, transform_indices = @transform_1, window_bounds = array<i64: 2, 4, 32>}, {pipeline_mode = #tpu.pipeline_mode<synchronous>, transform_indices = @transform_2, window_bounds = array<i64: 128, 128>}, {pipeline_mode = #tpu.pipeline_mode<synchronous>, transform_indices = @transform_3, window_bounds = array<i64: 1, 128>}, {pipeline_mode = #tpu.pipeline_mode<synchronous>, transform_indices = @transform_4, window_bounds = array<i64: 128, 128>}, {pipeline_mode = #tpu.pipeline_mode<synchronous>, transform_indices = @transform_5, window_bounds = array<i64: 1, 128>}, {pipeline_mode = #tpu.pipeline_mode<synchronous>, transform_indices = @transform_6, window_bounds = array<i64: 32, 128>}, {pipeline_mode = #tpu.pipeline_mode<synchronous>, transform_indices = @transform_7, window_bounds = array<i64: 1, 128>}, {transform_indices = @transform_8, window_bounds = array<i64: 1, 4, 128>}, {pipeline_mode = #tpu.pipeline_mode<synchronous>, transform_indices = @transform_9, window_bounds = array<i64: 2, 4, 32>}, {pipeline_mode = #tpu.pipeline_mode<synchronous>, transform_indices = @transform_10, window_bounds = array<i64: 2, 4, 32>}]} {
    %c0_i32 = arith.constant 0 : i32
    %0 = arith.cmpi eq, %arg0, %c0_i32 : i32
    %1 = arith.extui %0 : i1 to i32
    %c0_i32_0 = arith.constant 0 : i32
    %2 = arith.cmpi ne, %1, %c0_i32_0 : i32
    scf.if %2 {
      %cst_80 = arith.constant 0.000000e+00 : f32
      %185 = vector.broadcast %cst_80 : f32 to vector<2x4x128xf32>
      %c0_81 = arith.constant 0 : index
      %c0_82 = arith.constant 0 : index
      %c0_83 = arith.constant 0 : index
      %186 = vector.load %arg13[%c0_81, %c0_82, %c0_83] : memref<2x4x128xf32, #tpu.memory_space<vmem>>, vector<2x4x128xf32>
      tpu.vector_store %arg13[%c0_81, %c0_82, %c0_83], %185 {strides = array<i32>} : memref<2x4x128xf32, #tpu.memory_space<vmem>>, vector<2x4x128xf32>,
      %c0_84 = arith.constant 0 : index
      %c0_85 = arith.constant 0 : index
      %c0_86 = arith.constant 0 : index
      %187 = vector.load %arg2[%c0_84, %c0_85, %c0_86] : memref<2x4x32xf32, #tpu.memory_space<vmem>>, vector<2x4x32xf32>
      %c0_87 = arith.constant 0 : index
      %c0_88 = arith.constant 0 : index
      %c0_89 = arith.constant 0 : index
      %188 = vector.load %arg13[%c0_87, %c0_88, %c0_89] : memref<2x4x128xf32, #tpu.memory_space<vmem>>, vector<2x4x32xf32>
      tpu.vector_store %arg13[%c0_87, %c0_88, %c0_89], %187 {strides = array<i32>} : memref<2x4x128xf32, #tpu.memory_space<vmem>>, vector<2x4x32xf32>,
      %c0_90 = arith.constant 0 : index
      %c0_91 = arith.constant 0 : index
      %c0_92 = arith.constant 0 : index
      %189 = vector.load %arg3[%c0_90, %c0_91, %c0_92] : memref<2x4x32xf32, #tpu.memory_space<vmem>>, vector<2x4x32xf32>
      %c0_93 = arith.constant 0 : index
      %c0_94 = arith.constant 0 : index
      %c0_95 = arith.constant 0 : index
      %190 = vector.load %arg14[%c0_93, %c0_94, %c0_95] : memref<2x4x32xf32, #tpu.memory_space<vmem>>, vector<2x4x32xf32>
      tpu.vector_store %arg14[%c0_93, %c0_94, %c0_95], %189 {strides = array<i32>} : memref<2x4x32xf32, #tpu.memory_space<vmem>>, vector<2x4x32xf32>,
      %cst_96 = arith.constant 0.000000e+00 : f32
      %191 = vector.broadcast %cst_96 : f32 to vector<4x128xf32>
      %c0_97 = arith.constant 0 : index
      %c0_98 = arith.constant 0 : index
      %192 = vector.load %arg15[%c0_97, %c0_98] : memref<4x128xf32, #tpu.memory_space<vmem>>, vector<4x128xf32>
      tpu.vector_store %arg15[%c0_97, %c0_98], %191 {strides = array<i32>} : memref<4x128xf32, #tpu.memory_space<vmem>>, vector<4x128xf32>,
    } else {
    }
    %c8_i32 = arith.constant 8 : i32
    %3 = arith.muli %arg0, %c8_i32 : i32
    %4 = tpu.iota {dimensions = array<i32: 0>} : vector<4x1xi32>
    %c0_i32_1 = arith.constant 0 : i32
    %5 = vector.broadcast %c0_i32_1 : i32 to vector<4x1xi32>
    %c0_i32_2 = arith.constant 0 : i32
    %6 = vector.broadcast %c0_i32_2 : i32 to vector<4x1xi32>
    %c0_i32_3 = arith.constant 0 : i32
    %7 = vector.broadcast %c0_i32_3 : i32 to vector<4x1xi32>
    %8 = arith.cmpi eq, %4, %7 : vector<4x1xi32>
    %c0_i32_4 = arith.constant 0 : i32
    %9 = arith.addi %3, %c0_i32_4 : i32
    %c0_i32_5 = arith.constant 0 : i32
    %10 = arith.addi %9, %c0_i32_5 : i32
    %11 = arith.index_cast %10 : i32 to index
    %12 = memref.load %arg1[%11] : memref<64xi32, #tpu.memory_space<smem>>
    %13 = vector.broadcast %12 : i32 to vector<4x1xi32>
    %14 = arith.select %8, %13, %5 : vector<4x1xi1>, vector<4x1xi32>
    %c0_i32_6 = arith.constant 0 : i32
    %15 = vector.broadcast %c0_i32_6 : i32 to vector<4x1xi32>
    %16 = arith.cmpi eq, %4, %15 : vector<4x1xi32>
    %c0_i32_7 = arith.constant 0 : i32
    %17 = arith.addi %3, %c0_i32_7 : i32
    %c1_i32 = arith.constant 1 : i32
    %18 = arith.addi %17, %c1_i32 : i32
    %19 = arith.index_cast %18 : i32 to index
    %20 = memref.load %arg1[%19] : memref<64xi32, #tpu.memory_space<smem>>
    %21 = vector.broadcast %20 : i32 to vector<4x1xi32>
    %22 = arith.select %16, %21, %6 : vector<4x1xi1>, vector<4x1xi32>
    %c1_i32_8 = arith.constant 1 : i32
    %23 = vector.broadcast %c1_i32_8 : i32 to vector<4x1xi32>
    %24 = arith.cmpi eq, %4, %23 : vector<4x1xi32>
    %c2_i32 = arith.constant 2 : i32
    %25 = arith.addi %3, %c2_i32 : i32
    %c0_i32_9 = arith.constant 0 : i32
    %26 = arith.addi %25, %c0_i32_9 : i32
    %27 = arith.index_cast %26 : i32 to index
    %28 = memref.load %arg1[%27] : memref<64xi32, #tpu.memory_space<smem>>
    %29 = vector.broadcast %28 : i32 to vector<4x1xi32>
    %30 = arith.select %24, %29, %14 : vector<4x1xi1>, vector<4x1xi32>
    %c1_i32_10 = arith.constant 1 : i32
    %31 = vector.broadcast %c1_i32_10 : i32 to vector<4x1xi32>
    %32 = arith.cmpi eq, %4, %31 : vector<4x1xi32>
    %c2_i32_11 = arith.constant 2 : i32
    %33 = arith.addi %3, %c2_i32_11 : i32
    %c1_i32_12 = arith.constant 1 : i32
    %34 = arith.addi %33, %c1_i32_12 : i32
    %35 = arith.index_cast %34 : i32 to index
    %36 = memref.load %arg1[%35] : memref<64xi32, #tpu.memory_space<smem>>
    %37 = vector.broadcast %36 : i32 to vector<4x1xi32>
    %38 = arith.select %32, %37, %22 : vector<4x1xi1>, vector<4x1xi32>
    %c2_i32_13 = arith.constant 2 : i32
    %39 = vector.broadcast %c2_i32_13 : i32 to vector<4x1xi32>
    %40 = arith.cmpi eq, %4, %39 : vector<4x1xi32>
    %c4_i32 = arith.constant 4 : i32
    %41 = arith.addi %3, %c4_i32 : i32
    %c0_i32_14 = arith.constant 0 : i32
    %42 = arith.addi %41, %c0_i32_14 : i32
    %43 = arith.index_cast %42 : i32 to index
    %44 = memref.load %arg1[%43] : memref<64xi32, #tpu.memory_space<smem>>
    %45 = vector.broadcast %44 : i32 to vector<4x1xi32>
    %46 = arith.select %40, %45, %30 : vector<4x1xi1>, vector<4x1xi32>
    %c2_i32_15 = arith.constant 2 : i32
    %47 = vector.broadcast %c2_i32_15 : i32 to vector<4x1xi32>
    %48 = arith.cmpi eq, %4, %47 : vector<4x1xi32>
    %c4_i32_16 = arith.constant 4 : i32
    %49 = arith.addi %3, %c4_i32_16 : i32
    %c1_i32_17 = arith.constant 1 : i32
    %50 = arith.addi %49, %c1_i32_17 : i32
    %51 = arith.index_cast %50 : i32 to index
    %52 = memref.load %arg1[%51] : memref<64xi32, #tpu.memory_space<smem>>
    %53 = vector.broadcast %52 : i32 to vector<4x1xi32>
    %54 = arith.select %48, %53, %38 : vector<4x1xi1>, vector<4x1xi32>
    %c3_i32 = arith.constant 3 : i32
    %55 = vector.broadcast %c3_i32 : i32 to vector<4x1xi32>
    %56 = arith.cmpi eq, %4, %55 : vector<4x1xi32>
    %c6_i32 = arith.constant 6 : i32
    %57 = arith.addi %3, %c6_i32 : i32
    %c0_i32_18 = arith.constant 0 : i32
    %58 = arith.addi %57, %c0_i32_18 : i32
    %59 = arith.index_cast %58 : i32 to index
    %60 = memref.load %arg1[%59] : memref<64xi32, #tpu.memory_space<smem>>
    %61 = vector.broadcast %60 : i32 to vector<4x1xi32>
    %62 = arith.select %56, %61, %46 : vector<4x1xi1>, vector<4x1xi32>
    %c3_i32_19 = arith.constant 3 : i32
    %63 = vector.broadcast %c3_i32_19 : i32 to vector<4x1xi32>
    %64 = arith.cmpi eq, %4, %63 : vector<4x1xi32>
    %c6_i32_20 = arith.constant 6 : i32
    %65 = arith.addi %3, %c6_i32_20 : i32
    %c1_i32_21 = arith.constant 1 : i32
    %66 = arith.addi %65, %c1_i32_21 : i32
    %67 = arith.index_cast %66 : i32 to index
    %68 = memref.load %arg1[%67] : memref<64xi32, #tpu.memory_space<smem>>
    %69 = vector.broadcast %68 : i32 to vector<4x1xi32>
    %70 = arith.select %64, %69, %54 : vector<4x1xi1>, vector<4x1xi32>
    %71 = tpu.iota {dimensions = array<i32: 1>} : vector<4x128xi32>
    %c32_i32 = arith.constant 32 : i32
    %72 = vector.broadcast %c32_i32 : i32 to vector<4x1xi32>
    %73 = arith.addi %72, %62 : vector<4x1xi32>
    %74 = vector.broadcast %73 : vector<4x1xi32> to vector<4x128xi32>
    %75 = arith.cmpi eq, %71, %74 : vector<4x128xi32>
    %c96_i32 = arith.constant 96 : i32
    %76 = vector.broadcast %c96_i32 : i32 to vector<4x1xi32>
    %77 = arith.addi %76, %70 : vector<4x1xi32>
    %78 = vector.broadcast %77 : vector<4x1xi32> to vector<4x128xi32>
    %79 = arith.cmpi eq, %71, %78 : vector<4x128xi32>
    %80 = arith.ori %75, %79 : vector<4x128xi1>
    %c0 = arith.constant 0 : index
    %c0_22 = arith.constant 0 : index
    %c0_23 = arith.constant 0 : index
    %81 = vector.load %arg13[%c0, %c0_22, %c0_23] : memref<2x4x128xf32, #tpu.memory_space<vmem>>, vector<1x4x128xf32>
    %82 = vector.shape_cast %81 : vector<1x4x128xf32> to vector<4x128xf32>
    %cst = arith.constant 1.000000e+00 : f32
    %cst_24 = arith.constant 0.000000e+00 : f32
    %83 = vector.broadcast %cst : f32 to vector<4x128xf32>
    %84 = vector.broadcast %cst_24 : f32 to vector<4x128xf32>
    %85 = arith.select %80, %83, %84 : vector<4x128xi1>, vector<4x128xf32>
    %86 = arith.addf %82, %85 : vector<4x128xf32>
    %c0_25 = arith.constant 0 : index
    %c0_26 = arith.constant 0 : index
    %87 = vector.load %arg4[%c0_25, %c0_26] : memref<128x128xf32, #tpu.memory_space<vmem>>, vector<128x128xf32>
    %cst_27 = arith.constant dense<0.000000e+00> : vector<4x128xf32>
    %88 = tpu.matmul %86, %87, %cst_27 {dimension_numbers = #tpu.dot_dimension_numbers<[1], [0], [0], [1], [0, 0, 1, 1], [], []>} : vector<4x128xf32>, vector<128x128xf32>, vector<4x128xf32> -> vector<4x128xf32>
    %c0_28 = arith.constant 0 : index
    %c0_29 = arith.constant 0 : index
    %89 = vector.load %arg5[%c0_28, %c0_29] : memref<1x128xf32, #tpu.memory_space<vmem>>, vector<1x128xf32>
    %90 = vector.broadcast %89 : vector<1x128xf32> to vector<4x128xf32>
    %91 = arith.addf %88, %90 : vector<4x128xf32>
    %c0_30 = arith.constant 0 : index
    %c0_31 = arith.constant 0 : index
    %c0_32 = arith.constant 0 : index
    %92 = vector.load %arg14[%c0_30, %c0_31, %c0_32] : memref<2x4x32xf32, #tpu.memory_space<vmem>>, vector<1x4x32xf32>
    %93 = vector.shape_cast %92 : vector<1x4x32xf32> to vector<4x32xf32>
    %94 = tpu.iota {dimensions = array<i32: 1>} : vector<4x128xi32>
    %c64_i32 = arith.constant 64 : i32
    %95 = vector.broadcast %c64_i32 : i32 to vector<4x128xi32>
    %96 = arith.cmpi sge, %94, %95 : vector<4x128xi32>
    %c96_i32_33 = arith.constant 96 : i32
    %97 = vector.broadcast %c96_i32_33 : i32 to vector<4x128xi32>
    %98 = arith.cmpi slt, %94, %97 : vector<4x128xi32>
    %99 = arith.andi %96, %98 : vector<4x128xi1>
    %cst_34 = arith.constant 2.000000e+00 : f32
    %100 = vector.broadcast %cst_34 : f32 to vector<4x128xf32>
    %101 = arith.mulf %91, %100 : vector<4x128xf32>
    %102 = arith.select %99, %101, %91 : vector<4x128xi1>, vector<4x128xf32>
    %103 = arith.negf %102 : vector<4x128xf32>
    %104 = math.exp %103 : vector<4x128xf32>
    %cst_35 = arith.constant 1.000000e+00 : f32
    %105 = vector.broadcast %cst_35 : f32 to vector<4x128xf32>
    %106 = arith.addf %105, %104 : vector<4x128xf32>
    %107 = arith.divf %105, %106 : vector<4x128xf32>
    %cst_36 = arith.constant 2.000000e+00 : f32
    %108 = vector.broadcast %cst_36 : f32 to vector<4x128xf32>
    %109 = arith.mulf %107, %108 : vector<4x128xf32>
    %cst_37 = arith.constant 1.000000e+00 : f32
    %110 = vector.broadcast %cst_37 : f32 to vector<4x128xf32>
    %111 = arith.subf %109, %110 : vector<4x128xf32>
    %112 = arith.select %99, %111, %107 : vector<4x128xi1>, vector<4x128xf32>
    %113 = vector.extract_strided_slice %112 {offsets = [0, 0], sizes = [4, 32], strides = [1, 1]} : vector<4x128xf32> to vector<4x32xf32>
    %114 = vector.extract_strided_slice %112 {offsets = [0, 32], sizes = [4, 32], strides = [1, 1]} : vector<4x128xf32> to vector<4x32xf32>
    %115 = vector.extract_strided_slice %112 {offsets = [0, 64], sizes = [4, 32], strides = [1, 1]} : vector<4x128xf32> to vector<4x32xf32>
    %116 = vector.extract_strided_slice %112 {offsets = [0, 96], sizes = [4, 32], strides = [1, 1]} : vector<4x128xf32> to vector<4x32xf32>
    %117 = arith.mulf %114, %93 : vector<4x32xf32>
    %118 = arith.mulf %113, %115 : vector<4x32xf32>
    %119 = arith.addf %117, %118 : vector<4x32xf32>
    %120 = math.tanh %119 : vector<4x32xf32>
    %121 = arith.mulf %116, %120 : vector<4x32xf32>
    %c0_38 = arith.constant 0 : index
    %c0_39 = arith.constant 0 : index
    %c0_40 = arith.constant 0 : index
    %122 = vector.load %arg13[%c0_38, %c0_39, %c0_40] : memref<2x4x128xf32, #tpu.memory_space<vmem>>, vector<1x4x32xf32>
    %123 = vector.shape_cast %122 : vector<1x4x32xf32> to vector<4x32xf32>
    %124 = vector.shape_cast %121 : vector<4x32xf32> to vector<1x4x32xf32>
    tpu.vector_store %arg13[%c0_38, %c0_39, %c0_40], %124 {strides = array<i32>} : memref<2x4x128xf32, #tpu.memory_space<vmem>>, vector<1x4x32xf32>,
    %c0_41 = arith.constant 0 : index
    %c0_42 = arith.constant 0 : index
    %c0_43 = arith.constant 0 : index
    %125 = vector.load %arg14[%c0_41, %c0_42, %c0_43] : memref<2x4x32xf32, #tpu.memory_space<vmem>>, vector<1x4x32xf32>
    %126 = vector.shape_cast %125 : vector<1x4x32xf32> to vector<4x32xf32>
    %127 = vector.shape_cast %119 : vector<4x32xf32> to vector<1x4x32xf32>
    tpu.vector_store %arg14[%c0_41, %c0_42, %c0_43], %127 {strides = array<i32>} : memref<2x4x32xf32, #tpu.memory_space<vmem>>, vector<1x4x32xf32>,
    %c0_44 = arith.constant 0 : index
    %c0_45 = arith.constant 0 : index
    %128 = vector.load %arg15[%c0_44, %c0_45] : memref<4x128xf32, #tpu.memory_space<vmem>>, vector<4x32xf32>
    tpu.vector_store %arg15[%c0_44, %c0_45], %121 {strides = array<i32>} : memref<4x128xf32, #tpu.memory_space<vmem>>, vector<4x32xf32>,
    %c1 = arith.constant 1 : index
    %c0_46 = arith.constant 0 : index
    %c0_47 = arith.constant 0 : index
    %129 = vector.load %arg13[%c1, %c0_46, %c0_47] : memref<2x4x128xf32, #tpu.memory_space<vmem>>, vector<1x4x32xf32>
    %130 = vector.shape_cast %129 : vector<1x4x32xf32> to vector<4x32xf32>
    %c0_48 = arith.constant 0 : index
    %c32 = arith.constant 32 : index
    %131 = vector.load %arg15[%c0_48, %c32] : memref<4x128xf32, #tpu.memory_space<vmem>>, vector<4x32xf32>
    tpu.vector_store %arg15[%c0_48, %c32], %130 {strides = array<i32>} : memref<4x128xf32, #tpu.memory_space<vmem>>, vector<4x32xf32>,
    %c0_49 = arith.constant 0 : index
    %c0_50 = arith.constant 0 : index
    %132 = vector.load %arg15[%c0_49, %c0_50] : memref<4x128xf32, #tpu.memory_space<vmem>>, vector<4x128xf32>
    %c0_51 = arith.constant 0 : index
    %c0_52 = arith.constant 0 : index
    %133 = vector.load %arg6[%c0_51, %c0_52] : memref<128x128xf32, #tpu.memory_space<vmem>>, vector<128x128xf32>
    %cst_53 = arith.constant dense<0.000000e+00> : vector<4x128xf32>
    %134 = tpu.matmul %132, %133, %cst_53 {dimension_numbers = #tpu.dot_dimension_numbers<[1], [0], [0], [1], [0, 0, 1, 1], [], []>} : vector<4x128xf32>, vector<128x128xf32>, vector<4x128xf32> -> vector<4x128xf32>
    %c0_54 = arith.constant 0 : index
    %c0_55 = arith.constant 0 : index
    %135 = vector.load %arg7[%c0_54, %c0_55] : memref<1x128xf32, #tpu.memory_space<vmem>>, vector<1x128xf32>
    %136 = vector.broadcast %135 : vector<1x128xf32> to vector<4x128xf32>
    %137 = arith.addf %134, %136 : vector<4x128xf32>
    %c1_56 = arith.constant 1 : index
    %c0_57 = arith.constant 0 : index
    %c0_58 = arith.constant 0 : index
    %138 = vector.load %arg14[%c1_56, %c0_57, %c0_58] : memref<2x4x32xf32, #tpu.memory_space<vmem>>, vector<1x4x32xf32>
    %139 = vector.shape_cast %138 : vector<1x4x32xf32> to vector<4x32xf32>
    %140 = tpu.iota {dimensions = array<i32: 1>} : vector<4x128xi32>
    %c64_i32_59 = arith.constant 64 : i32
    %141 = vector.broadcast %c64_i32_59 : i32 to vector<4x128xi32>
    %142 = arith.cmpi sge, %140, %141 : vector<4x128xi32>
    %c96_i32_60 = arith.constant 96 : i32
    %143 = vector.broadcast %c96_i32_60 : i32 to vector<4x128xi32>
    %144 = arith.cmpi slt, %140, %143 : vector<4x128xi32>
    %145 = arith.andi %142, %144 : vector<4x128xi1>
    %cst_61 = arith.constant 2.000000e+00 : f32
    %146 = vector.broadcast %cst_61 : f32 to vector<4x128xf32>
    %147 = arith.mulf %137, %146 : vector<4x128xf32>
    %148 = arith.select %145, %147, %137 : vector<4x128xi1>, vector<4x128xf32>
    %149 = arith.negf %148 : vector<4x128xf32>
    %150 = math.exp %149 : vector<4x128xf32>
    %cst_62 = arith.constant 1.000000e+00 : f32
    %151 = vector.broadcast %cst_62 : f32 to vector<4x128xf32>
    %152 = arith.addf %151, %150 : vector<4x128xf32>
    %153 = arith.divf %151, %152 : vector<4x128xf32>
    %cst_63 = arith.constant 2.000000e+00 : f32
    %154 = vector.broadcast %cst_63 : f32 to vector<4x128xf32>
    %155 = arith.mulf %153, %154 : vector<4x128xf32>
    %cst_64 = arith.constant 1.000000e+00 : f32
    %156 = vector.broadcast %cst_64 : f32 to vector<4x128xf32>
    %157 = arith.subf %155, %156 : vector<4x128xf32>
    %158 = arith.select %145, %157, %153 : vector<4x128xi1>, vector<4x128xf32>
    %159 = vector.extract_strided_slice %158 {offsets = [0, 0], sizes = [4, 32], strides = [1, 1]} : vector<4x128xf32> to vector<4x32xf32>
    %160 = vector.extract_strided_slice %158 {offsets = [0, 32], sizes = [4, 32], strides = [1, 1]} : vector<4x128xf32> to vector<4x32xf32>
    %161 = vector.extract_strided_slice %158 {offsets = [0, 64], sizes = [4, 32], strides = [1, 1]} : vector<4x128xf32> to vector<4x32xf32>
    %162 = vector.extract_strided_slice %158 {offsets = [0, 96], sizes = [4, 32], strides = [1, 1]} : vector<4x128xf32> to vector<4x32xf32>
    %163 = arith.mulf %160, %139 : vector<4x32xf32>
    %164 = arith.mulf %159, %161 : vector<4x32xf32>
    %165 = arith.addf %163, %164 : vector<4x32xf32>
    %166 = math.tanh %165 : vector<4x32xf32>
    %167 = arith.mulf %162, %166 : vector<4x32xf32>
    %c1_65 = arith.constant 1 : index
    %c0_66 = arith.constant 0 : index
    %c0_67 = arith.constant 0 : index
    %168 = vector.load %arg13[%c1_65, %c0_66, %c0_67] : memref<2x4x128xf32, #tpu.memory_space<vmem>>, vector<1x4x32xf32>
    %169 = vector.shape_cast %168 : vector<1x4x32xf32> to vector<4x32xf32>
    %170 = vector.shape_cast %167 : vector<4x32xf32> to vector<1x4x32xf32>
    tpu.vector_store %arg13[%c1_65, %c0_66, %c0_67], %170 {strides = array<i32>} : memref<2x4x128xf32, #tpu.memory_space<vmem>>, vector<1x4x32xf32>,
    %c1_68 = arith.constant 1 : index
    %c0_69 = arith.constant 0 : index
    %c0_70 = arith.constant 0 : index
    %171 = vector.load %arg14[%c1_68, %c0_69, %c0_70] : memref<2x4x32xf32, #tpu.memory_space<vmem>>, vector<1x4x32xf32>
    %172 = vector.shape_cast %171 : vector<1x4x32xf32> to vector<4x32xf32>
    %173 = vector.shape_cast %165 : vector<4x32xf32> to vector<1x4x32xf32>
    tpu.vector_store %arg14[%c1_68, %c0_69, %c0_70], %173 {strides = array<i32>} : memref<2x4x32xf32, #tpu.memory_space<vmem>>, vector<1x4x32xf32>,
    %c0_71 = arith.constant 0 : index
    %c0_72 = arith.constant 0 : index
    %174 = vector.load %arg8[%c0_71, %c0_72] : memref<32x128xf32, #tpu.memory_space<vmem>>, vector<32x128xf32>
    %cst_73 = arith.constant dense<0.000000e+00> : vector<4x128xf32>
    %175 = tpu.matmul %167, %174, %cst_73 {dimension_numbers = #tpu.dot_dimension_numbers<[1], [0], [0], [1], [0, 0, 1, 1], [], []>} : vector<4x32xf32>, vector<32x128xf32>, vector<4x128xf32> -> vector<4x128xf32>
    %c0_74 = arith.constant 0 : index
    %c0_75 = arith.constant 0 : index
    %176 = vector.load %arg9[%c0_74, %c0_75] : memref<1x128xf32, #tpu.memory_space<vmem>>, vector<1x128xf32>
    %177 = vector.broadcast %176 : vector<1x128xf32> to vector<4x128xf32>
    %178 = arith.addf %175, %177 : vector<4x128xf32>
    %c0_76 = arith.constant 0 : index
    %c0_77 = arith.constant 0 : index
    %c0_78 = arith.constant 0 : index
    %179 = vector.load %arg10[%c0_76, %c0_77, %c0_78] : memref<1x4x128xf32, #tpu.memory_space<vmem>>, vector<1x4x128xf32>
    %180 = vector.shape_cast %179 : vector<1x4x128xf32> to vector<4x128xf32>
    %181 = vector.shape_cast %178 : vector<4x128xf32> to vector<1x4x128xf32>
    tpu.vector_store %arg10[%c0_76, %c0_77, %c0_78], %181 {strides = array<i32>} : memref<1x4x128xf32, #tpu.memory_space<vmem>>, vector<1x4x128xf32>,
    %c7_i32 = arith.constant 7 : i32
    %182 = arith.cmpi eq, %arg0, %c7_i32 : i32
    %183 = arith.extui %182 : i1 to i32
    %c0_i32_79 = arith.constant 0 : i32
    %184 = arith.cmpi ne, %183, %c0_i32_79 : i32
    scf.if %184 {
      %c0_80 = arith.constant 0 : index
      %c0_81 = arith.constant 0 : index
      %c0_82 = arith.constant 0 : index
      %185 = vector.load %arg13[%c0_80, %c0_81, %c0_82] : memref<2x4x128xf32, #tpu.memory_space<vmem>>, vector<2x4x32xf32>
      %c0_83 = arith.constant 0 : index
      %c0_84 = arith.constant 0 : index
      %c0_85 = arith.constant 0 : index
      %186 = vector.load %arg11[%c0_83, %c0_84, %c0_85] : memref<2x4x32xf32, #tpu.memory_space<vmem>>, vector<2x4x32xf32>
      tpu.vector_store %arg11[%c0_83, %c0_84, %c0_85], %185 {strides = array<i32>} : memref<2x4x32xf32, #tpu.memory_space<vmem>>, vector<2x4x32xf32>,
      %c0_86 = arith.constant 0 : index
      %c0_87 = arith.constant 0 : index
      %c0_88 = arith.constant 0 : index
      %187 = vector.load %arg14[%c0_86, %c0_87, %c0_88] : memref<2x4x32xf32, #tpu.memory_space<vmem>>, vector<2x4x32xf32>
      %c0_89 = arith.constant 0 : index
      %c0_90 = arith.constant 0 : index
      %c0_91 = arith.constant 0 : index
      %188 = vector.load %arg12[%c0_89, %c0_90, %c0_91] : memref<2x4x32xf32, #tpu.memory_space<vmem>>, vector<2x4x32xf32>
      tpu.vector_store %arg12[%c0_89, %c0_90, %c0_91], %187 {strides = array<i32>} : memref<2x4x32xf32, #tpu.memory_space<vmem>>, vector<2x4x32xf32>,
    } else {
    }
    return
  }
  func.func @transform_0(%arg0: i32, %arg1: memref<64xi32, #tpu.memory_space<smem>>) -> (i32, i32, i32) {
    %c0_i32 = arith.constant 0 : i32
    %c0_i32_0 = arith.constant 0 : i32
    %c0_i32_1 = arith.constant 0 : i32
    %c0_i32_2 = arith.constant 0 : i32
    return %c0_i32, %c0_i32_0, %c0_i32_1 : i32, i32, i32
  }
  func.func @transform_1(%arg0: i32, %arg1: memref<64xi32, #tpu.memory_space<smem>>) -> (i32, i32, i32) {
    %c0_i32 = arith.constant 0 : i32
    %c0_i32_0 = arith.constant 0 : i32
    %c0_i32_1 = arith.constant 0 : i32
    %c0_i32_2 = arith.constant 0 : i32
    return %c0_i32, %c0_i32_0, %c0_i32_1 : i32, i32, i32
  }
  func.func @transform_2(%arg0: i32, %arg1: memref<64xi32, #tpu.memory_space<smem>>) -> (i32, i32) {
    %c0_i32 = arith.constant 0 : i32
    %c0_i32_0 = arith.constant 0 : i32
    %c0_i32_1 = arith.constant 0 : i32
    return %c0_i32, %c0_i32_0 : i32, i32
  }
  func.func @transform_3(%arg0: i32, %arg1: memref<64xi32, #tpu.memory_space<smem>>) -> (i32, i32) {
    %c0_i32 = arith.constant 0 : i32
    %c0_i32_0 = arith.constant 0 : i32
    %c0_i32_1 = arith.constant 0 : i32
    return %c0_i32, %c0_i32_0 : i32, i32
  }
  func.func @transform_4(%arg0: i32, %arg1: memref<64xi32, #tpu.memory_space<smem>>) -> (i32, i32) {
    %c0_i32 = arith.constant 0 : i32
    %c0_i32_0 = arith.constant 0 : i32
    %c0_i32_1 = arith.constant 0 : i32
    return %c0_i32, %c0_i32_0 : i32, i32
  }
  func.func @transform_5(%arg0: i32, %arg1: memref<64xi32, #tpu.memory_space<smem>>) -> (i32, i32) {
    %c0_i32 = arith.constant 0 : i32
    %c0_i32_0 = arith.constant 0 : i32
    %c0_i32_1 = arith.constant 0 : i32
    return %c0_i32, %c0_i32_0 : i32, i32
  }
  func.func @transform_6(%arg0: i32, %arg1: memref<64xi32, #tpu.memory_space<smem>>) -> (i32, i32) {
    %c0_i32 = arith.constant 0 : i32
    %c0_i32_0 = arith.constant 0 : i32
    %c0_i32_1 = arith.constant 0 : i32
    return %c0_i32, %c0_i32_0 : i32, i32
  }
  func.func @transform_7(%arg0: i32, %arg1: memref<64xi32, #tpu.memory_space<smem>>) -> (i32, i32) {
    %c0_i32 = arith.constant 0 : i32
    %c0_i32_0 = arith.constant 0 : i32
    %c0_i32_1 = arith.constant 0 : i32
    return %c0_i32, %c0_i32_0 : i32, i32
  }
  func.func @transform_8(%arg0: i32, %arg1: memref<64xi32, #tpu.memory_space<smem>>) -> (i32, i32, i32) {
    %c0_i32 = arith.constant 0 : i32
    %c0_i32_0 = arith.constant 0 : i32
    %c0_i32_1 = arith.constant 0 : i32
    return %arg0, %c0_i32, %c0_i32_0 : i32, i32, i32
  }
  func.func @transform_9(%arg0: i32, %arg1: memref<64xi32, #tpu.memory_space<smem>>) -> (i32, i32, i32) {
    %c0_i32 = arith.constant 0 : i32
    %c0_i32_0 = arith.constant 0 : i32
    %c0_i32_1 = arith.constant 0 : i32
    %c0_i32_2 = arith.constant 0 : i32
    return %c0_i32, %c0_i32_0, %c0_i32_1 : i32, i32, i32
  }
  func.func @transform_10(%arg0: i32, %arg1: memref<64xi32, #tpu.memory_space<smem>>) -> (i32, i32, i32) {
    %c0_i32 = arith.constant 0 : i32
    %c0_i32_0 = arith.constant 0 : i32
    %c0_i32_1 = arith.constant 0 : i32
    %c0_i32_2 = arith.constant 0 : i32
    return %c0_i32, %c0_i32_0, %c0_i32_1 : i32, i32, i32
  }
}

</mosaic_0001>

<bundles_post_ra>
// kernel: model_forward_seq.1
= control target key start
LH: loop header
LB: loop body
LE: loop exit
PB: predicated region body
PF: predicated region fallthrough
CT: control target
= control target key end

     0   :  { %s1861_s0 = inlined_call_operand.vmem [shape: s32[64], index: 0, kind: input, shape index: {}]   ;;  %s1862_s1 = inlined_call_operand.vmem [shape: f32[2,4,32], index: 1, kind: input, shape index: {}]   ;;  %s1863_s2 = inlined_call_operand.vmem [shape: f32[2,4,32], index: 2, kind: input, shape index: {}]   ;;  %s1864_s3 = inlined_call_operand.hbm [shape: f32[128,128], index: 3, kind: input, shape index: {}]   ;;  %s1865_s4 = inlined_call_operand.vmem [shape: f32[1,128], index: 4, kind: input, shape index: {}]   ;;  %s1866_s5 = inlined_call_operand.hbm [shape: f32[128,128], index: 5, kind: input, shape index: {}]   ;;  %s1867_s6 = inlined_call_operand.vmem [shape: f32[1,128], index: 6, kind: input, shape index: {}]   ;;  %s1868_s7 = inlined_call_operand.vmem [shape: f32[32,128], index: 7, kind: input, shape index: {}]   ;;  %s1869_s8 = inlined_call_operand.vmem [shape: f32[1,128], index: 8, kind: input, shape index: {}]   ;;  %s1870_s9 = inlined_call_operand.hbm [shape: f32[8,4,128], index: 9, kind: output, shape index: {0}]   ;;  %s1871_s10 = inlined_call_operand.hbm [shape: f32[2,4,32], index: 10, kind: output, shape index: {1}]   ;;  %s1872_s11 = inlined_call_operand.hbm [shape: f32[2,4,32], index: 11, kind: output, shape index: {2}]  }
   0x1   :  { %1882 = sst [smem:[#allocation25_spill]] %s1862_s1  ;;  %s17_s19 = sshll.u32 %s1861_s0, 4  ;;  %s18_s19 = int_to_ptr.vmem [resolvable:$true] %s17_s19 }
   0x2   :  { %s1247_s20 = scalar_lea.vmem %s18_s19, 16  ;;  %p1252_p1 = scmp.lt.s32.totalorder %s18_s19, %s18_s19 }
   0x3   :  { %p1248_p0 = scmp.ne.s32.totalorder %s18_s19, %s1247_s20  ;;  %p1253_p2 = scmp.lt.s32.totalorder %s1247_s20, %s1247_s20 }
   0x5   :  { %p1254_p3 = por %p1253_p2, %p1252_p1 }
   0x7   :  { %p1255_p4 = pnand %p1254_p3, %p1248_p0 }
   0x9   :  { %1258 = shalt.err (!%p1255_p4)  }
   0xa   :  { %s1445_s21 = smov [#allocation6]  }
   0xb   :  { %20 = dma.vmem_to_smem %s18_s19, 16, %s1445_s21, [#allocation5] }
   0xc   :  { %1411 = dma.done.wait [#allocation5], 16 }
   0xd   :  { %1412 = vsyncadd [#allocation5], 4294967280 }
   0xe   :  { %22 = sfence }
   0xf   :  { %23 = vsyncpa [#allocation8], 0 }
  0x10   :  { %24 = vsyncpa [#allocation11], 0 }
  0x11   :  { %25 = vsyncpa [#allocation9], 0 }
  0x12   :  { %27 = vsyncpa [#allocation9 + $0x1], 0 }
  0x13   :  { %28 = vsyncpa [#allocation14], 0  ;;  %s1524_s22 = smov 0   ;;  %s1526_s0 = smov 0  }
  0x14   :  { %s1528_s23 = smov 0   ;;  %s1530_s24 = smov 0  }
  0x15 LB: > { %1883 = sst [smem:[#allocation21_spill]] %s1439_s23  ;;  %s1545_s25 = sadd.s32 4294967295, %s1443_s24   ;;  %s1443_s24 = sphi %s1530_s24, %s1912_s24   ;;  %s1439_s23 = sphi %s1528_s23, %s1914_s23   ;;  %s1435_s0 = sphi %s1526_s0, %s1916_s0   ;;  %s1431_s22 = sphi %s1524_s22, %s1915_s22  }
  0x16   : > { %s949_s26 = sadd.s32 4294967294, %s1443_s24   ;;  %s1549_s27 = sadd.s32 1, %s1443_s24  }
  0x17   : > { %1884 = sst [smem:[#allocation22_spill]] %s1549_s27  ;;  %s209_s28 = sadd.s32 1, %s1439_s23 }
  0x18   : > { %s206_s29 = ssub.s32 %s1443_s24, %s1549_s27  ;;  %p219_p5 = scmp.ne.s32.totalorder %s1439_s23, %s1435_s0 }
  0x19   : > { %p207_p6 = scmp.eq.s32.totalorder %s206_s29, 0  ;;  %p1873_p7 = scmp.eq.s32.totalorder %s1545_s25, 7 }
  0x1a   : > { %p225_p8 = scmp.ne.s32.totalorder %s1435_s0, %s1431_s22  ;;  %p226_p9 = scmp.eq.s32.totalorder %s949_s26, 7 }
  0x1b   : > { %s1560_s30 = scalar_select %p207_p6, %s1439_s23, %s209_s28  }
  0x1c   : > { %p1564_p10 = por %p1873_p7, %p219_p5  ;;  %p1568_p11 = por %p226_p9, %p225_p8 }
  0x1d   : > { %1885 = sst [smem:[#allocation23_spill]] %s1560_s30  ;;  %p950_p12 = scmp.ge.s32.totalorder %s1443_s24, 1 }
  0x1e   : > { %s1886_s12 = scalar_select %p1564_p10, 1, 0 }
  0x1f   : > { %s1887_s13 = scalar_select %p1568_p11, 1, 0 }
  0x20   : > { %p275_p13 = scmp.lt.s32.totalorder %s1443_s24, 9  ;;  %p1874_p1 = scmp.eq.s32.totalorder %s1545_s25, 0 }
  0x21   : > { %1888 = sst [smem:[#allocation24_spill]] %s1887_s13  ;;  %s1446_s15 = smov [#allocation7]  }
  0x22   : > { %p1576_p2 = pnand %p950_p12, %p275_p13  ;;  %s293_s16 = sshll.u32 %s1446_s15, 4  ;;  %s294_s16 = int_to_ptr.vmem [resolvable:$true] %s293_s16 }
  0x23   : > { %s1447_s18 = smov [#allocation10]   ;;  %s1259_s26 = scalar_lea.hbm %s1864_s3, 2048 }
  0x24   : > { %s1889_s14 = scalar_select %p1576_p2, 1, 0 }
  0x25   : > { %p1168_p3 = pneg %p1576_p2  ;;  %s309_s19 = sshll.u32 %s1447_s18, 4  ;;  %s1588_s19 = int_to_ptr.vmem [resolvable:$true] %s309_s19 }
  0x26   : > { %p1260_p5 = scmp.ne.s32.totalorder %s1864_s3, %s1259_s26  ;;  %p1266_p12 = scmp.lt.u32.totalorder %s1259_s26, %s1864_s3 }
  0x27   : > { %p1584_p4 = pnand %p1874_p1, %p1168_p3 }
  0x29   : > { %p1261_p6 = pneg %p1584_p4 }
  0x2b   : > { %p1262_p8 = pnand %p1261_p6, %p1260_p5 }
  0x2d   : > { %p1263_p9 = pneg %p1262_p8 }
  0x2f   : > { %p1268_p13 = pnand %p1266_p12, %p1263_p9 }
  0x31   : > { %1271 = shalt.err (!%p1268_p13)
}
  0x32   : > { %s1272_s18 = scalar_lea.vmem %s294_s16, 2048  ;;  %p1280_p1 = scmp.lt.s32.totalorder %s294_s16, %s294_s16 }
  0x33   : > { %p1273_p3 = scmp.ne.s32.totalorder %s294_s16, %s1272_s18  ;;  %p1281_p11 = scmp.lt.s32.totalorder %s1272_s18, %s1272_s18 }
  0x35   : > { %p1275_p7 = pnand %p1273_p3, %p1261_p6  ;;  %p1282_p10 = por %p1281_p11, %p1280_p1 }
  0x37   : > { %p1276_p0 = pneg %p1275_p7 }
  0x39   : > { %p1283_p2 = pnand %p1282_p10, %p1276_p0 }
  0x3b   : > { %1286 = shalt.err (!%p1283_p2)
}
  0x3c   : > { %s1448_s20 = smov 128   ;;  %s1449_s21 = smov 8  }
  0x3d   : > { %1171 = dma.hbm_to_vmem [thread:$0]  (!%p1584_p4), %s1864_s3, 2048, %s294_s16, [#allocation8], %s1448_s20, %s1448_s20, %s1449_s21  }
  0x3e   : > { %s1287_s15 = scalar_lea.hbm %s1866_s5, 2048 }
  0x3f   : > { %p1288_p7 = scmp.ne.s32.totalorder %s1866_s5, %s1287_s15  ;;  %p1294_p0 = scmp.lt.u32.totalorder %s1287_s15, %s1866_s5 }
  0x41   : > { %p1290_p10 = pnand %p1288_p7, %p1261_p6 }
  0x43   : > { %p1291_p11 = pneg %p1290_p10 }
  0x45   : > { %p1296_p1 = pnand %p1294_p0, %p1291_p11 }
  0x47   : > { %1299 = shalt.err (!%p1296_p1)
}
  0x48   : > { %s1300_s16 = scalar_lea.vmem %s1588_s19, 2048  ;;  %p1308_p9 = scmp.lt.s32.totalorder %s1588_s19, %s1588_s19 }
  0x49   : > { %p1301_p2 = scmp.ne.s32.totalorder %s1588_s19, %s1300_s16  ;;  %p1309_p12 = scmp.lt.s32.totalorder %s1300_s16, %s1300_s16 }
  0x4b   : > { %p1303_p5 = pnand %p1301_p2, %p1261_p6  ;;  %p1310_p13 = por %p1309_p12, %p1308_p9 }
  0x4d   : > { %p1304_p8 = pneg %p1303_p5 }
  0x4f   : > { %p1311_p3 = pnand %p1310_p13, %p1304_p8 }
  0x51   : > { %1314 = shalt.err (!%p1311_p3)
}
  0x52   : > { %1174 = dma.hbm_to_vmem [thread:$0]  (!%p1584_p4), %s1866_s5, 2048, %s1588_s19, [#allocation11], %s1448_s20, %s1448_s20, %s1449_s21  }
  0x53   : > { %p1891_p7 = scmp.ne.s32.totalorder %s1889_s14, 0 }
  0x54   : > { %p1892_p10 = scmp.eq.s32.totalorder (!%p1891_p7), %s1545_s25, 0 }
  0x55   : > { %334 = sbr.rel (%p1891_p7) target bundleno = 1891 (0x763), region = 52 }
  0x5c   : > { %1414 = dma.done.wait (%p1892_p10), [#allocation8], 2048   ;;  %p1893_p6 = pmov %p1892_p10 }
  0x5e   : > { %1416 = vsyncadd (%p1893_p6), [#allocation8], 4294965248  ;;  %p1894_p11 = pmov %p1893_p6 }
  0x5f   : > { %p1895_p0 = pmov %p1893_p6 }
  0x60   : > { %1418 = dma.done.wait (%p1894_p11), [#allocation11], 2048  }
  0x61   : > { %1420 = vsyncadd (%p1895_p0), [#allocation11], 4294965248  ;;  %s1881_s13 = sand.u32 1, %s1435_s0   ;;  %p1896_p4 = scmp.ne.s32.totalorder %s1545_s25, 0 }
  0x62   : > { %s1650_s17 = sshll.u32 %s1881_s13, 2  ;;  %s1897_s1 = sld [smem:[#allocation25_spill]] (!%p1896_p4)  ;;  %vm379_vm0 = vcmask (!%p1896_p4), 257024   ;;  %v1450_v2 = vmov (!%p1896_p4), 0.0   ;;  %v382_v3 = vld [vmem:[%s1863_s2] sm:$0xf] (!%p1896_p4) }
  0x63   : > { %s366_s14 = scalar_lea.vmem [#allocation12], %s1650_s17  ;;  %374 = sbr.rel (%p1896_p4) target bundleno = 106 (0x6a), region = 64  ;;  %375 = vst [vmem:[#allocation2] sm:$0xf] (!%p1896_p4), %v1450_v2  ;;  %376 = vst [vmem:[#allocation2 + $0x4] sm:$0xf] (!%p1896_p4), %v1450_v2 }
  0x64   : > { %386 = vst [vmem:[#allocation4] sm:$0xf] (!%p1896_p4), %v1450_v2  ;;  %v383_v4 = vld [vmem:[%s1863_s2 + $0x4] sm:$0xf] (!%p1896_p4)  ;;  %384 = vst.msk [vmem:[#allocation3] sm:$0xf] (!%p1896_p4), %vm379_vm0, %v382_v3 }
  0x65   : > { %385 = vst.msk [vmem:[#allocation3 + $0x4] sm:$0xf] (!%p1896_p4), %vm379_vm0, %v383_v4 }
  0x68   : > { %v377_v0 = vld [vmem:[%s1897_s1] sm:$0xf] (!%p1896_p4)  ;;  %v378_v1 = vld [vmem:[%s1897_s1 + $0x4] sm:$0xf] (!%p1896_p4) }
  0x69   : > { %380 = vst.msk [vmem:[#allocation2] sm:$0xf] (!%p1896_p4), %vm379_vm0, %v377_v0  ;;  %381 = vst.msk [vmem:[#allocation2 + $0x4] sm:$0xf] (!%p1896_p4), %vm379_vm0, %v378_v1 }
  0x6a PF: > { %v435_v5 = vld [vmem:[#allocation7] sm:$0xff]  ;;  %v436_v6 = vld [vmem:[#allocation7 + $0x8] sm:$0xff]  ;;  %v437_v7 = vld [vmem:[#allocation7 + $0x10] sm:$0xff]  ;;  %v388_v8 = vlaneseq  ;;  %v1451_v9 = vmov 0.0|0.0   ;;  %vm1452_vm1 = vmmov 0   ;;  %v1453_v12 = vmov 0.0  }
  0x6b   : > { %1096 = vmatprep.subr.bf16.mxu0 %v1451_v9  ;;  %v1097_v10 = vpack.c.bf16 %v436_v6, %v435_v5  ;;  %v438_v11 = vld [vmem:[#allocation7 + $0x18] sm:$0xff]  ;;  %1047 = vmatprep.mubr.msk.f32.mxu0 %vm1452_vm1, %v1453_v12  ;;  %s1671_s18 = sshll.u32 %s1545_s25, 3  ;;  %v439_v15 = vld [vmem:[#allocation7 + $0x20] sm:$0xff]  ;;  %v440_v16 = vld [vmem:[#allocation7 + $0x28] sm:$0xff]  ;;  %vm568_vm12 = vcmask 257024   ;;  %vm582_vm13 = vcmask 519424  }
  0x6c   : > { %v389_v13 = vshrl.u32 %v388_v8, 7  ;;  %s391_s16 = sld [smem:[#allocation6 + %s1671_s18]]  ;;  %s394_s23 = sadd.s32 1, %s1671_s18  ;;  %1120 = vmatprep.subr.bf16.mxu1 %v1451_v9  ;;  %1082 = vmatprep.mubr.msk.f32.mxu1 %vm1452_vm1, %v1453_v12  ;;  %v1100_v14 = vpack.c.bf16 %v438_v11, %v437_v7  ;;  %v1103_v17 = vpack.c.bf16 %v440_v16, %v439_v15  ;;  %v441_v18 = vld [vmem:[#allocation7 + $0x30] sm:$0xff]  ;;  %v442_v19 = vld [vmem:[#allocation7 + $0x38] sm:$0xff]  ;;  %v443_v27 = vld [vmem:[#allocation7 + $0x40] sm:$0xff] }
  0x6d   : > { %1098 = vmatpush3.bf16.msra.mxu0 %v1097_v10  ;;  %s395_s27 = sld [smem:[#allocation6 + %s394_s23]]  ;;  %s399_s19 = sadd.s32 2, %s1671_s18  ;;  %v1106_v25 = vpack.c.bf16 %v442_v19, %v441_v18  ;;  %v444_v28 = vld [vmem:[#allocation7 + $0x48] sm:$0xff]  ;;  %v445_v38 = vld [vmem:[#allocation7 + $0x50] sm:$0xff]  ;;  %v446_v39 = vld [vmem:[#allocation7 + $0x58] sm:$0xff]  ;;  %v426_v42 = vand.u32 127, %v388_v8 }
  0x6e   : > { %1099 = vmatprep.subr.bf16.mxu0 %v1451_v9  ;;  %s400_s20 = sld [smem:[#allocation6 + %s399_s19]]  ;;  %s403_s21 = sadd.s32 3, %s1671_s18  ;;  %vm390_vm2 = vcmp.eq.s32.totalorder %v389_v13, 0  ;;  %vm398_vm3 = vcmp.eq.s32.totalorder %v389_v13, 1  ;;  %vm407_vm4 = vcmp.eq.s32.totalorder %v389_v13, 2  ;;  %vm416_vm5 = vcmp.eq.s32.totalorder %v389_v13, 3 }
  0x6f   : > { %s408_s30 = sadd.s32 4, %s1671_s18  ;;  %s404_s26 = sld [smem:[#allocation6 + %s403_s21]]  ;;  %v1109_v35 = vpack.c.bf16 %v444_v28, %v443_v27  ;;  %v1112_v45 = vpack.c.bf16 %v446_v39, %v445_v38  ;;  %v447_v46 = vld [vmem:[#allocation7 + $0x60] sm:$0xff]  ;;  %v448_v47 = vld [vmem:[#allocation7 + $0x68] sm:$0xff]  ;;  %v449_v49 = vld [vmem:[#allocation7 + $0x70] sm:$0xff]  ;;  %vm529_vm9 = vcmp.ge.s32.totalorder %v426_v42, 64 }
  0x70   : > { %s409_s28 = sld [smem:[#allocation6 + %s408_s30]]  ;;  %s412_s29 = sadd.s32 5, %s1671_s18  ;;  %v1115_v48 = vpack.c.bf16 %v448_v47, %v447_v46  ;;  %v450_v50 = vld [vmem:[#allocation7 + $0x78] sm:$0xff]  ;;  %v432_v52 = vld [vmem:[#allocation2] sm:$0xf]  ;;  %vm530_vm10 = vcmp.lt.s32.totalorder %v426_v42, 96 }
  0x71   : > { %1101 = vmatpush3.bf16.msra.mxu0 %v1100_v14  ;;  %s417_s15 = sadd.s32 6, %s1671_s18  ;;  %s413_s23 = sld [smem:[#allocation6 + %s412_s29]]  ;;  %v1118_v51 = vpack.c.bf16 %v450_v50, %v449_v49  ;;  %v959_v55 = vld [vmem:[%s1865_s4] ss:$0 sm:$0xff]  ;;  %vm1706_vm11 = vmand %vm529_vm9, %vm530_vm10  ;;  %v528_v5 = vld [vmem:[#allocation3] sm:$0xf] }
  0x72   : > { %1102 = vmatprep.subr.bf16.mxu0 %v1451_v9  ;;  %v392_v20 = vstv %s391_s16  ;;  %s418_s13 = sld [smem:[#allocation6 + %s417_s15]]  ;;  %s421_s19 = sadd.s32 7, %s1671_s18  ;;  %v585_v13 = vld [vmem:[#allocation10] sm:$0xff]  ;;  %v586_v14 = vld [vmem:[#allocation10 + $0x8] sm:$0xff]  ;;  %v587_v16 = vld [vmem:[#allocation10 + $0x10] sm:$0xff]  ;;  %vm733_vm14 = vcmask 261120  }
  0x73   : > { %v393_v21 = vsel %vm390_vm2, %v392_v20, 0  ;;  %v396_v22 = vstv %s395_s27  ;;  %s422_s21 = sld [smem:[#allocation6 + %s421_s19]]  ;;  %s1454_s16 = smov 64   ;;  %v1121_v15 = vpack.c.bf16 %v586_v14, %v585_v13  ;;  %v589_v19 = vld [vmem:[#allocation10 + $0x20] sm:$0xff]  ;;  %v590_v20 = vld [vmem:[#allocation10 + $0x28] sm:$0xff]  ;;  %v723_v59 = vld [vmem:[%s1868_s7 + $0x8] sm:$0xff] }
  0x74   : > { %v397_v23 = vsel %vm390_vm2, %v396_v22, 0  ;;  %v401_v24 = vstv %s400_s20  ;;  %s1455_s27 = smov 32   ;;  %v591_v22 = vld [vmem:[#allocation10 + $0x30] sm:$0xff]  ;;  %v593_v27 = vld [vmem:[#allocation10 + $0x40] sm:$0xff]  ;;  %v594_v28 = vld [vmem:[#allocation10 + $0x48] sm:$0xff]  ;;  %s1456_s18 = smov 96  }
  0x75   : > { %1104 = vmatpush3.bf16.msra.mxu0 %v1103_v17  ;;  %v402_v26 = vsel %vm398_vm3, %v401_v24, %v393_v21  ;;  %v405_v29 = vstv %s404_s26  ;;  %v588_v17 = vld [vmem:[#allocation10 + $0x18] sm:$0xff]  ;;  %1122 = vmatpush3.bf16.msra.mxu1 %v1121_v15  ;;  %v1127_v21 = vpack.c.bf16 %v590_v20, %v589_v19  ;;  %p967_p1 = scmp.ne.s32.totalorder %s1545_s25, 7 }
  0x76   : > { %1105 = vmatprep.subr.bf16.mxu0 %v1451_v9  ;;  %v410_v30 = vstv %s409_s28  ;;  %v406_v31 = vsel %vm398_vm3, %v405_v29, %v397_v23  ;;  %v1124_v18 = vpack.c.bf16 %v588_v17, %v587_v16  ;;  %1123 = vmatprep.subr.bf16.mxu1 %v1451_v9  ;;  %v592_v23 = vld [vmem:[#allocation10 + $0x38] sm:$0xff]  ;;  %v1133_v29 = vpack.c.bf16 %v594_v28, %v593_v27 }
  0x77   : > { %v411_v32 = vsel %vm407_vm4, %v410_v30, %v402_v26  ;;  %v414_v33 = vstv %s413_s23  ;;  %v577_v26 = vld [vmem:[#allocation2 + $0x4] sm:$0xf]  ;;  %v679_v39 = vld [vmem:[#allocation3 + $0x4] sm:$0xf] }
  0x78   : > { %v419_v34 = vstv %s418_s13  ;;  %v415_v36 = vsel %vm407_vm4, %v414_v33, %v406_v31  ;;  %v595_v30 = vld [vmem:[#allocation10 + $0x50] sm:$0xff]  ;;  %v596_v31 = vld [vmem:[#allocation10 + $0x58] sm:$0xff]  ;;  %v597_v33 = vld [vmem:[#allocation10 + $0x60] sm:$0xff] }
  0x79   : > { %1107 = vmatpush3.bf16.msra.mxu0 %v1106_v25  ;;  %v420_v37 = vsel %vm416_vm5, %v419_v34, %v411_v32  ;;  %v423_v40 = vstv %s422_s21  ;;  %1125 = vmatpush3.bf16.msra.mxu1 %v1124_v18  ;;  %v1130_v25 = vpack.c.bf16 %v592_v23, %v591_v22  ;;  %v1136_v32 = vpack.c.bf16 %v596_v31, %v595_v30  ;;  %v598_v34 = vld [vmem:[#allocation10 + $0x68] sm:$0xff] }
  0x7a   : > { %1108 = vmatprep.subr.bf16.mxu0 %v1451_v9  ;;  %v424_v41 = vsel %vm416_vm5, %v423_v40, %v415_v36  ;;  %v427_v43 = vadd.s32 32, %v420_v37  ;;  %1126 = vmatprep.subr.bf16.mxu1 %v1451_v9  ;;  %v599_v36 = vld [vmem:[#allocation10 + $0x70] sm:$0xff]  ;;  %v600_v37 = vld [vmem:[#allocation10 + $0x78] sm:$0xff] }
  0x7b   : > { %v429_v44 = vadd.s32 96, %v424_v41  ;;  %v1142_v38 = vpack.c.bf16 %v600_v37, %v599_v36 }
  0x7c   : > { %vm428_vm6 = vcmp.eq.s32.totalorder %v426_v42, %v427_v43 }
  0x7d   : > { %1110 = vmatpush3.bf16.msra.mxu0 %v1109_v35  ;;  %vm430_vm7 = vcmp.eq.s32.totalorder %v426_v42, %v429_v44  ;;  %1128 = vmatpush3.bf16.msra.mxu1 %v1127_v21  ;;  %v1139_v35 = vpack.c.bf16 %v598_v34, %v597_v33 }
  0x7e   : > { %1111 = vmatprep.subr.bf16.mxu0 %v1451_v9  ;;  %vm431_vm8 = vmor %vm428_vm6, %vm430_vm7  ;;  %1129 = vmatprep.subr.bf16.mxu1 %v1451_v9 }
  0x7f   : > { %v433_v53 = vsel %vm431_vm8, 1.0, %v1453_v12 }
  0x80   : > { %v434_v54 = vadd.f32 %v433_v53, %v432_v52 }
  0x81   : > { %1113 = vmatpush3.bf16.msra.mxu0 %v1112_v45  ;;  %1131 = vmatpush3.bf16.msra.mxu1 %v1130_v25  ;;  %v962_v45 = vld [vmem:[%s1867_s6] ss:$0 sm:$0xff] }
  0x82   : > { %1114 = vmatprep.subr.bf16.mxu0 %v1451_v9  ;;  %1132 = vmatprep.subr.bf16.mxu1 %v1451_v9 }
  0x85   : > { %1116 = vmatpush3.bf16.msra.mxu0 %v1115_v48  ;;  %1134 = vmatpush3.bf16.msra.mxu1 %v1133_v29 }
  0x86   : > { %1117 = vmatprep.subr.bf16.mxu0 %v1451_v9  ;;  %1135 = vmatprep.subr.bf16.mxu1 %v1451_v9 }
  0x89   : > { %1119 = vmatpush3.bf16.msra.mxu0 %v1118_v51  ;;  %1137 = vmatpush3.bf16.msra.mxu1 %v1136_v32 }
  0x8a   : > { %1144 = vmatprep.subr.bf16.mxu0 %v1451_v9  ;;  %1138 = vmatprep.subr.bf16.mxu1 %v1451_v9 }
  0x8c   : > { %1048 = vmatmul.mubr.f32.vlgmr.msra.gmra.mrb[0].mxu0 %v434_v54 }
  0x8d   : > { %1093 = vmatprep.mubr.msk.f32.mxu0 %vm1452_vm1, %v1453_v12  ;;  %1140 = vmatpush3.bf16.msra.mxu1 %v1139_v35 }
  0x8e   : > { %1141 = vmatprep.subr.bf16.mxu1 %v1451_v9 }
  0x91   : > { %1143 = vmatpush3.bf16.msra.mxu1 %v1142_v38 }
 0x15f   : > { %v524_v56 = vpop.f32.mrb[0].mxu0 }
 0x160   : > { %v525_v57 = vadd.f32 %v959_v55, %v524_v56  ;;  %v1049_v58 = vpop.f32.mrb[1].mxu0 }
 0x162   : > { %v532_v60 = vmul.f32 2.0, %v525_v57 }
 0x164   : > { %v533_v61 = vsel %vm1706_vm11, %v532_v60, %v525_v57 }
 0x165   : > { %v960_v62 = vmul.f32 -1.442695, %v533_v61 }
 0x167   : > { %1235 = vpow2.f32 %v960_v62 }
 0x171   : > { %v1236_v63 = vpop.eup %1235 }
 0x172   : > { %v537_v0 = vadd.f32 1.0, %v1236_v63 }
 0x174   : > { %1237 = vrcp.f32 %v537_v0 }
 0x17e   : > { %v1238_v1 = vpop.eup %1237 }
 0x17f   : > { %v540_v2 = vmul.f32 2.0, %v1238_v1 }
 0x181   : > { %v961_v3 = vadd.f32 -1.0, %v540_v2  ;;  %v724_v2 = vld [vmem:[%s1868_s7 + $0x10] sm:$0xff] }
 0x183   : > { %v542_v4 = vsel %vm1706_vm11, %v961_v3, %v1238_v1  ;;  %v722_v1 = vld [vmem:[%s1868_s7] sm:$0xff] }
 0x184   : > { %549 = vrot.lane.b32.xlu0 %v542_v4, %s1454_s16  ;;  %v1145_v3 = vpack.c.bf16 %v723_v59, %v722_v1 }
 0x186   : > { %1146 = vmatpush3.bf16.msra.mxu0 %v1145_v3 }
 0x187   : > { %1147 = vmatprep.subr.bf16.mxu0 %v1451_v9 }
 0x188   : > { %544 = vrot.lane.b32.xlu0 %v528_v5, %s1455_s27 }
 0x1f6   : > { %v550_v6 = vpop.permute.xlu0 %549 }
 0x1f7   : > { %v552_v7 = vmul.f32 %v550_v6, %v542_v4 }
 0x1f9   : > { %554 = vrot.lane.b32.xlu1 %v552_v7, %s1455_s27 }
 0x1fa   : > { %v545_v8 = vpop.permute.xlu0 %544 }
 0x1fb   : > { %v547_v10 = vmul.f32 %v545_v8, %v542_v4 }
 0x26b   : > { %v555_v11 = vpop.permute.xlu1 %554 }
 0x26c   : > { %v1717_v12 = vadd.f32 %v555_v11, %v547_v10 }
 0x26e   : > { %1239 = vtanh.f32 %v1717_v12 }
 0x278   : > { %v1240_v24 = vpop.eup %1239 }
 0x279   : > { %560 = vrot.lane.b32.xlu1 %v1240_v24, %s1454_s16 }
 0x27d   : > { %579 = vrot.lane.b32.xlu1 %v577_v26, %s1455_s27 }
 0x281   : > { %692 = vrot.lane.b32.xlu1 %v679_v39, %s1455_s27 }
 0x2eb   : > { %v561_v40 = vpop.permute.xlu1 %560 }
 0x2ec   : > { %v563_v41 = vmul.f32 %v561_v40, %v542_v4  ;;  %v725_v4 = vld [vmem:[%s1868_s7 + $0x18] sm:$0xff] }
 0x2ed   : > { %v1148_v5 = vpack.c.bf16 %v725_v4, %v724_v2 }
 0x2ee   : > { %565 = vrot.lane.b32.xlu0 %v563_v41, %s1455_s27 }
 0x2ef   : > { %v580_v42 = vpop.permute.xlu1 %579  ;;  %1149 = vmatpush3.bf16.msra.mxu0 %v1148_v5 }
 0x2f3   : > { %v693_v61 = vpop.permute.xlu1 %692 }
 0x360   : > { %v566_v43 = vpop.permute.xlu0 %565 }
 0x361   : > { %569 = vst.msk [vmem:[#allocation2] sm:$0xf] %vm568_vm12, %v566_v43  ;;  %575 = vst.msk [vmem:[#allocation4] sm:$0xf] %vm568_vm12, %v566_v43 }
 0x362   : > { %583 = vst.msk [vmem:[#allocation4] sm:$0xf] %vm582_vm13, %v580_v42 }
 0x368   : > { %v811_v16 = vld [vmem:[#allocation2] sm:$0xf] (!%p967_p1) }
 0x369   : > { %v584_v44 = vld [vmem:[#allocation4] sm:$0xf]  ;;  %813 = vst.msk [vmem:[#allocation13] sm:$0xf] (!%p967_p1), %vm568_vm12, %v811_v16 }
 0x36a   : > { %1083 = vmatmul.mubr.f32.vlgmr.msra.gmra.mrb[0].mxu1 %v584_v44 }
 0x43d   : > { %v674_v46 = vpop.f32.mrb[0].mxu1 }
 0x43e   : > { %v675_v47 = vadd.f32 %v962_v45, %v674_v46  ;;  %v1084_v48 = vpop.f32.mrb[1].mxu1 }
 0x440   : > { %v680_v49 = vmul.f32 2.0, %v675_v47 }
 0x442   : > { %v681_v50 = vsel %vm1706_vm11, %v680_v49, %v675_v47 }
 0x443   : > { %v963_v51 = vmul.f32 -1.442695, %v681_v50 }
 0x445   : > { %1241 = vpow2.f32 %v963_v51 }
 0x44f   : > { %v1242_v52 = vpop.eup %1241 }
 0x450   : > { %v685_v53 = vadd.f32 1.0, %v1242_v52 }
 0x452   : > { %1243 = vrcp.f32 %v685_v53 }
 0x45c   : > { %v1244_v54 = vpop.eup %1243 }
 0x45d   : > { %v688_v55 = vmul.f32 2.0, %v1244_v54 }
 0x45f   : > { %v964_v56 = vadd.f32 -1.0, %v688_v55 }
 0x461   : > { %v690_v57 = vsel %vm1706_vm11, %v964_v56, %v1244_v54 }
 0x462   : > { %697 = vrot.lane.b32.xlu0 %v690_v57, %s1454_s16  ;;  %v695_v62 = vmul.f32 %v693_v61, %v690_v57 }
 0x4d4   : > { %v698_v58 = vpop.permute.xlu0 %697 }
 0x4d5   : > { %v700_v60 = vmul.f32 %v698_v58, %v690_v57 }
 0x4d7   : > { %702 = vrot.lane.b32.xlu0 %v700_v60, %s1455_s27 }
 0x549   : > { %v703_v63 = vpop.permute.xlu0 %702 }
 0x54a   : > { %v705_v0 = vadd.f32 %v703_v63, %v695_v62 }
 0x54c   : > { %1245 = vtanh.f32 %v705_v0 }
 0x556   : > { %v1246_v6 = vpop.eup %1245 }
 0x557   : > { %708 = vrot.lane.b32.xlu1 %v1246_v6, %s1454_s16 }
 0x55b   : > { %571 = vrot.lane.b32.xlu1 %v1717_v12, %s1456_s18  ;;  %v965_v12 = vld [vmem:[%s1869_s8] ss:$0 sm:$0xff] }
 0x5c9   : > { %v709_v7 = vpop.permute.xlu1 %708 }
 0x5ca   : > { %v711_v8 = vmul.f32 %v709_v7, %v690_v57 }
 0x5cc   : > { %713 = vrot.lane.b32.xlu0 %v711_v8, %s1455_s27 }
 0x5cd   : > { %v572_v10 = vpop.permute.xlu1 %571 }
 0x5ce   : > { %574 = vst.msk [vmem:[#allocation3] sm:$0xf] %vm568_vm12, %v572_v10 }
 0x5d0   : > { %718 = vrot.lane.b32.xlu0 %v705_v0, %s1456_s18 }
 0x5d5   : > { %v815_v18 = vld [vmem:[#allocation3] sm:$0xf] (!%p967_p1) }
 0x5d6   : > { %817 = vst.msk [vmem:[#allocation15] sm:$0xf] (!%p967_p1), %vm568_vm12, %v815_v18 }
 0x63e   : > { %v714_v11 = vpop.permute.xlu0 %713 }
 0x63f   : > { %716 = vst.msk [vmem:[#allocation2 + $0x4] sm:$0xf] %vm568_vm12, %v714_v11  ;;  %1094 = vmatmul.mubr.msk.f32.vlgmr.msra.gmra.mrb[2].mxu0 %vm733_vm14, %v714_v11 }
 0x642   : > { %v719_v9 = vpop.permute.xlu0 %718 }
 0x643   : > { %721 = vst.msk [vmem:[#allocation3 + $0x4] sm:$0xf] %vm568_vm12, %v719_v9 }
 0x646   : > { %v812_v17 = vld [vmem:[#allocation2 + $0x4] sm:$0xf] (!%p967_p1) }
 0x647   : > { %814 = vst.msk [vmem:[#allocation13 + $0x4] sm:$0xf] (!%p967_p1), %vm568_vm12, %v812_v17 }
 0x64a   : > { %v816_v19 = vld [vmem:[#allocation3 + $0x4] sm:$0xf] (!%p967_p1) }
 0x64b   : > { %818 = vst.msk [vmem:[#allocation15 + $0x4] sm:$0xf] (!%p967_p1), %vm568_vm12, %v816_v19 }
 0x70f   : > { %810 = sbr.rel (%p967_p1) target bundleno = 1814 (0x716), region = 68 }
 0x712   : > { %v802_v13 = vpop.f32.mrb[2].mxu0 }
 0x713   : > { %v803_v14 = vadd.f32 %v965_v12, %v802_v13  ;;  %v1095_v15 = vpop.f32.mrb[3].mxu0 }
 0x715   : > { %806 = vst [vmem:[%s366_s14] sm:$0xf] %v803_v14 }
 0x716 PF: > { %s1457_s27 = smov [#allocation13]   ;;  %s969_s28 = sshll.u32 %s1545_s25, 6 }
 0x717   : > { %s843_s26 = sshll.u32 %s1457_s27, 4  ;;  %p1900_p5 = scmp.eq.s32.totalorder %s1545_s25, 7  ;;  %s844_s26 = int_to_ptr.vmem [resolvable:$true] %s843_s26 }
 0x718   : > { %s1315_s29 = scalar_lea.vmem %s844_s26, 128  ;;  %p1322_p12 = scmp.lt.s32.totalorder %s844_s26, %s844_s26 }
 0x719   : > { %p1316_p2 = scmp.ne.s32.totalorder %s844_s26, %s1315_s29  ;;  %p1323_p13 = scmp.lt.s32.totalorder %s1315_s29, %s1315_s29 }
 0x71b   : > { %p1317_p8 = pnand %p1316_p2, %p1900_p5  ;;  %p1324_p3 = por %p1323_p13, %p1322_p12 }
 0x71d   : > { %p1318_p9 = pneg %p1317_p8 }
 0x71f   : > { %p1325_p7 = pnand %p1324_p3, %p1318_p9 }
 0x721   : > { %1328 = shalt.err (!%p1325_p7)
}
 0x722   : > { %s1329_s19 = scalar_lea.hbm %s1871_s10, 128  ;;  %p1901_p6 = pmov %p1900_p5 }
 0x723   : > { %p1330_p10 = scmp.ne.s32.totalorder %s1871_s10, %s1329_s19  ;;  %p1335_p4 = scmp.lt.u32.totalorder %s1329_s19, %s1871_s10 }
 0x725   : > { %p1331_p11 = pnand %p1330_p10, %p1901_p6 }
 0x727   : > { %p1332_p0 = pneg %p1331_p11 }
 0x729   : > { %p1337_p1 = pnand %p1335_p4, %p1332_p0 }
 0x72b   : > { %1340 = shalt.err (!%p1337_p1)
}
 0x72c   : > { %s1458_s30 = smov 4   ;;  %p1902_p2 = pmov %p1900_p5 }
 0x72d   : > { %s1796_s21 = scalar_lea.hbm %s1870_s9, %s969_s28  ;;  %s833_s19 = sshll.u32 %s366_s14, 4  ;;  %s834_s19 = int_to_ptr.vmem [resolvable:$true] %s833_s19 }
 0x72e   : > { %1160 = dma.vmem_to_hbm [thread:$0]  (%p1902_p2), %s844_s26, 128, %s1871_s10, [#allocation14], %s1454_s16, %s1454_s16, %s1458_s30  }
 0x72f   : > { %s1903_s13 = sand.u32 1, %s1435_s0   ;;  %s1341_s20 = scalar_lea.vmem %s834_s19, 64 }
 0x730   : > { %s820_s18 = scalar_lea.sflag [#allocation9], %s1903_s13  ;;  %p1342_p5 = scmp.ne.s32.totalorder %s834_s19, %s1341_s20 }
 0x731   : > { %p1904_p8 = scmp.ne.s32.totalorder %s1886_s12, 0  ;;  %s1459_s27 = smov [#allocation12]  }
 0x732   : > { %s1345_s29 = sshll.u32 %s1459_s27, 4  ;;  %s1346_s29 = int_to_ptr.vmem [resolvable:$false] %s1345_s29 }
 0x733   : > { %p1343_p9 = pnand %p1342_p5, %p1904_p8  ;;  %s1347_s1 = scalar_lea.vmem %s1346_s29, 128 }
 0x734   : > { %p1348_p13 = scmp.lt.s32.totalorder %s834_s19, %s1346_s29  ;;  %p1349_p3 = scmp.lt.s32.totalorder %s1347_s1, %s1341_s20 }
 0x735   : > { %p1344_p12 = pneg %p1343_p9 }
 0x736   : > { %p1350_p7 = por %p1349_p3, %p1348_p13 }
 0x738   : > { %p1351_p10 = pnand %p1350_p7, %p1344_p12 }
 0x73a   : > { %1354 = shalt.err (!%p1351_p10)
}
 0x73b   : > { %s1355_s17 = scalar_lea.hbm %s1796_s21, 64  ;;  %s1359_s28 = scalar_lea.hbm %s1870_s9, 512 }
 0x73c   : > { %p1356_p6 = scmp.ne.s32.totalorder %s1796_s21, %s1355_s17  ;;  %p1360_p4 = scmp.lt.u32.totalorder %s1796_s21, %s1870_s9 }
 0x73d   : > { %p1361_p1 = scmp.lt.u32.totalorder %s1359_s28, %s1355_s17  ;;  %p1363_p5 = scmp.lt.u32.totalorder %s1355_s17, %s1796_s21 }
 0x73e   : > { %p1357_p11 = pnand %p1356_p6, %p1904_p8 }
 0x73f   : > { %p1362_p2 = por %p1361_p1, %p1360_p4 }
 0x740   : > { %p1358_p0 = pneg %p1357_p11 }
 0x741   : > { %p1364_p9 = por %p1363_p5, %p1362_p2 }
 0x743   : > { %p1365_p12 = pnand %p1364_p9, %p1358_p0 }
 0x745   : > { %1368 = shalt.err (!%p1365_p12)
}
 0x746   : > { %1158 = dma.vmem_to_hbm [thread:$0]  (%p1904_p8), %s834_s19, 64, %s1796_s21, %s820_s18  }
 0x747   : > { %s1460_s1 = smov [#allocation15]   ;;  %p1905_p3 = scmp.eq.s32.totalorder %s1545_s25, 7 }
 0x748   : > { %s856_s13 = sshll.u32 %s1460_s1, 4  ;;  %s857_s13 = int_to_ptr.vmem [resolvable:$true] %s856_s13 }
 0x749   : > { %s1369_s20 = scalar_lea.vmem %s857_s13, 128  ;;  %p1376_p6 = scmp.lt.s32.totalorder %s857_s13, %s857_s13 }
 0x74a   : > { %p1370_p13 = scmp.ne.s32.totalorder %s857_s13, %s1369_s20  ;;  %p1377_p11 = scmp.lt.s32.totalorder %s1369_s20, %s1369_s20 }
 0x74c   : > { %p1371_p7 = pnand %p1370_p13, %p1905_p3  ;;  %p1378_p4 = por %p1377_p11, %p1376_p6 }
 0x74e   : > { %p1372_p10 = pneg %p1371_p7 }
 0x750   : > { %p1379_p1 = pnand %p1378_p4, %p1372_p10 }
 0x752   : > { %1382 = shalt.err (!%p1379_p1)
}
 0x753   : > { %s1383_s12 = scalar_lea.hbm %s1872_s11, 128  ;;  %p1906_p0 = pmov %p1905_p3 }
 0x754   : > { %p1384_p8 = scmp.ne.s32.totalorder %s1872_s11, %s1383_s12  ;;  %p1389_p9 = scmp.lt.u32.totalorder %s1383_s12, %s1872_s11 }
 0x756   : > { %p1385_p2 = pnand %p1384_p8, %p1906_p0 }
 0x758   : > { %p1386_p5 = pneg %p1385_p2 }
 0x75a   : > { %p1391_p12 = pnand %p1389_p9, %p1386_p5 }
 0x75c   : > { %1394 = shalt.err (!%p1391_p12)
}
 0x75d   : > { %p1907_p13 = pmov %p1906_p0  ;;  %p1908_p3 = pmov %p1906_p0 }
 0x75f   : > { %1162 = dma.vmem_to_hbm [thread:$0]  (%p1907_p13), %s857_s13, 128, %s1872_s11, [#allocation14], %s1454_s16, %s1454_s16, %s1458_s30  }
 0x760   : > { %1422 = dma.done.wait (%p1908_p3), [#allocation14], 256   ;;  %p1909_p7 = pmov %p1906_p0 }
 0x762   : > { %1424 = vsyncadd (%p1909_p7), [#allocation14], 4294967040 }
 0x763 PF: > { %s1910_s28 = sld [smem:[#allocation24_spill]]  ;;  %p1187_p10 = scmp.ge.s32.totalorder %s1443_s24, 2 }
 0x764   : > { %s879_s15 = sand.u32 1, %s1431_s22  }
 0x765   : > { %s880_s23 = scalar_lea.sflag [#allocation9], %s879_s15 }
 0x769   : > { %p1911_p6 = scmp.ne.s32.totalorder %s1910_s28, 0 }
 0x76b   : > { %p1176_p11 = pnand %p1187_p10, %p1911_p6 }
 0x76d   : > { %1426 = dma.done.wait (!%p1176_p11), %s880_s23, 64  }
 0x76e   : > { %1428 = vsyncadd (!%p1176_p11), %s880_s23, 4294967232  ;;  %s1912_s24 = sld [smem:[#allocation22_spill]]  ;;  %s1913_s1 = sld [smem:[#allocation21_spill]] }
 0x76f   : > { %s1914_s23 = sld [smem:[#allocation23_spill]]  ;;  %s1915_s22 = smov %s1435_s0 }
 0x774   : > { %p31_p4 = scmp.ge.s32.totalorder %s1912_s24, 10   ;;  %s1916_s0 = smov %s1913_s1 }
 0x776   :  { %33 = sbr.rel (!%p31_p4) target bundleno = 21 (0x15), region = 119 }
 0x77d   :  { %885 = vsyncpa [#allocation8], 1 }
 0x77e   :  { %887 = vsyncpa [#allocation8 + $0x1], 1 }
 0x77f   :  { %888 = vsyncpa [#allocation11], 1 }
 0x780   :  { %889 = vsyncpa [#allocation9], 1 }
 0x781   :  { %891 = vsyncpa [#allocation9 + $0x1], 1 }
 0x782   :  { %892 = vsyncpa [#allocation14], 1 }

</bundles_post_ra>
